<compile_context>
chip_gen: v7x
topology: tpu7x:2x2x1
jax: 0.10.0
libtpu: 0.0.40
codegen_flags: <defaults>
</compile_context>

<pallas_src>
import jax
import jax.numpy as jnp
from jax.experimental import pallas as pl
from jax.experimental.pallas import tpu as pltpu


def _round_up(x: int, m: int) -> int:
    return ((x + m - 1) // m) * m


def _cdiv(a: int, b: int) -> int:
    return (a + b - 1) // b


def _patch_embed_kernel(x_ref, w_ref, o_ref):
    # Fold the activation dtype cast into the kernel (cheap, hidden under MXU).
    x = x_ref[...].astype(w_ref.dtype)
    # (tile_m, K) @ (K, Ep): K on sublanes, E on lanes -> canonical MXU feed,
    # no weight transpose inside the kernel.  f32 accumulation.
    acc = jax.lax.dot_general(
        x,
        w_ref[...],
        dimension_numbers=(((1,), (0,)), ((), ())),
        preferred_element_type=jnp.float32,
    )
    o_ref[...] = acc.astype(o_ref.dtype)


def patch_embed(
    hidden_states: jax.Array,
    conv_weight: jax.Array,  # (embed_dim, in_channels, temporal_patch_size, patch_size, patch_size)
    *,
    in_channels: int,
    temporal_patch_size: int,
    patch_size: int,
    embed_dim: int,
    tile_m: int = 512,
    compute_dtype=None,  # e.g. jnp.bfloat16 to force bf16 MXU operands on v5e f32 weights
) -> jax.Array:
    target_dtype = conv_weight.dtype
    if compute_dtype is None:
        compute_dtype = target_dtype
    K = in_channels * temporal_patch_size * patch_size * patch_size

    # --- glue: mirrors `hidden_states.view(-1, C, T, P, P)` + weight flatten ---
    # Reshape is a view (no HBM pass); activation dtype is cast in-kernel.
    x = hidden_states.reshape(-1, K)
    N = x.shape[0]

    # One-time tiny weight prep (few MB, negligible vs. activations):
    # (E, K) -> cast -> transpose -> (K, E) -> lane-pad E to Ep.
    Ep = _round_up(embed_dim, 128)
    w = conv_weight.reshape(embed_dim, K).astype(compute_dtype).T  # (K, E)
    if Ep != embed_dim:
        w = jnp.pad(w, ((0, 0), (0, Ep - embed_dim)))

    # Row tile: multiple of 256 (MXU/sublane friendly), big enough for the HBM
    # roofline, but capped so the grid has >= 2 steps (both v7x TensorCores).
    tile_m = max(256, (int(tile_m) // 256) * 256)
    tile_m = min(tile_m, _round_up(_cdiv(N, 2), 256))
    grid_m = _cdiv(N, tile_m)  # non-divisible N -> masked partial final block

    def itemsize(dt):
        return jnp.dtype(dt).itemsize

    # Double-buffered activation/output tiles + single-buffered resident weight.
    vmem_bytes = (
        2 * tile_m * K * itemsize(x.dtype)
        + 1 * K * Ep * itemsize(compute_dtype)
        + 2 * tile_m * Ep * itemsize(target_dtype)
    )
    try:
        vmem_cap = int(pltpu.get_tpu_info().vmem_capacity_bytes)
    except Exception:
        vmem_cap = 64 << 20  # conservative (v7x-sized) fallback
    vmem_limit = int(
        min(
            max(vmem_bytes + (4 << 20), 32 << 20),
            max(32 << 20, vmem_cap - (16 << 20)),  # 112 MiB on v5e/v6e, 48 MiB on v7x
        )
    )

    cost = pl.CostEstimate(
        flops=2 * N * K * Ep,
        transcendentals=0,
        bytes_accessed=(
            N * K * itemsize(x.dtype)
            + K * Ep * itemsize(compute_dtype)
            + N * Ep * itemsize(target_dtype)
        ),
    )

    out = pl.pallas_call(
        _patch_embed_kernel,
        out_shape=jax.ShapeDtypeStruct((N, Ep), target_dtype),
        grid_spec=pltpu.PrefetchScalarGridSpec(
            num_scalar_prefetch=0,
            grid=(grid_m,),
            in_specs=[
                # Activation row tile; K unpadded (block last dim == full array
                # extent is legal under the (8,128) rule) -> no pad HBM pass.
                pl.BlockSpec((tile_m, K), lambda i: (i, 0)),
                # Full weight resident in VMEM; constant block index => fetched
                # once; single-buffered to free VMEM headroom (v7x).
                pl.BlockSpec((K, Ep), lambda i: (0, 0),
                             pipeline_mode=pl.Buffered(1)),
            ],
            out_specs=pl.BlockSpec((tile_m, Ep), lambda i: (i, 0)),
        ),
        compiler_params=pltpu.CompilerParams(
            dimension_semantics=("parallel",),  # megacore row-tile sharding on v7x
            vmem_limit_bytes=vmem_limit,
        ),
        cost_estimate=cost,
    )(x, w)

    # Strip lane padding back to the PyTorch result shape (-1, embed_dim).
    if Ep != embed_dim:
        out = out[:, :embed_dim]
    return out


if __name__ == "__main__":
    # Small, shape-consistent configuration (scaled-down Qwen2.5-VL vision stem).
    patch_size = 4
    temporal_patch_size = 2
    in_channels = 3
    embed_dim = 128            # lane-friendly embed dim (real model: 1152 = 9*128)
    n_patches = 300            # NOT a multiple of the row tile -> partial final block

    K = in_channels * temporal_patch_size * patch_size * patch_size  # 96 (stays unpadded)

    key = jax.random.PRNGKey(0)
    k_x, k_w = jax.random.split(key)

    # Flat patch sequence in f32 (the cast to the weight dtype happens in-kernel,
    # mirroring `hidden_states.to(dtype=target_dtype)`).
    hidden_states = jax.random.normal(k_x, (n_patches, K), dtype=jnp.float32)

    # Conv3d weight, shape (E, C, T, P, P), no bias, bf16 (realistic Qwen dtype).
    conv_weight = (
        jax.random.normal(
            k_w,
            (embed_dim, in_channels, temporal_patch_size, patch_size, patch_size),
            dtype=jnp.float32,
        )
        * 0.02
    ).astype(jnp.bfloat16)

    out = patch_embed(
        hidden_states,
        conv_weight,
        in_channels=in_channels,
        temporal_patch_size=temporal_patch_size,
        patch_size=patch_size,
        embed_dim=embed_dim,
    )
    out = jax.block_until_ready(out)

    # Pure-JAX reference of the Conv3d-as-matmul forward pass (same dtype rules:
    # operands in weight dtype, f32 accumulation, output in weight dtype).
    ref = jax.lax.dot_general(
        hidden_states.reshape(-1, K).astype(conv_weight.dtype),
        conv_weight.reshape(embed_dim, K),
        dimension_numbers=(((1,), (1,)), ((), ())),
        preferred_element_type=jnp.float32,
    ).astype(conv_weight.dtype)

    assert out.shape == (n_patches, embed_dim), out.shape
    assert out.dtype == conv_weight.dtype, out.dtype
    err = float(jnp.max(jnp.abs(out.astype(jnp.float32) - ref.astype(jnp.float32))))
    assert err < 1e-2, err

    print("KERNEL_OK")
</pallas_src>

<mosaic_0001>
module attributes {stable_mosaic.version = 11 : i64} {
  func.func @_patch_embed_kernel(%arg0: i32, %arg1: memref<256x96xf32, #tpu.memory_space<vmem>>, %arg2: memref<96x128xbf16, #tpu.memory_space<vmem>>, %arg3: memref<256x128xbf16, #tpu.memory_space<vmem>>) attributes {dimension_semantics = [#tpu.dimension_semantics<parallel>], iteration_bounds = array<i64: 2>, scalar_prefetch = 0 : i64, scratch_operands = 0 : i64, tpu.core_type = #tpu.core_type<tc>, window_params = [{transform_indices = @transform_0, window_bounds = array<i64: 256, 96>}, {pipeline_mode = #tpu.pipeline_mode<synchronous>, transform_indices = @transform_1, window_bounds = array<i64: 96, 128>}, {transform_indices = @transform_2, window_bounds = array<i64: 256, 128>}]} {
    %c0 = arith.constant 0 : index
    %c0_0 = arith.constant 0 : index
    %0 = vector.load %arg1[%c0, %c0_0] : memref<256x96xf32, #tpu.memory_space<vmem>>, vector<256x96xf32>
    %1 = arith.truncf %0 : vector<256x96xf32> to vector<256x96xbf16>
    %c0_1 = arith.constant 0 : index
    %c0_2 = arith.constant 0 : index
    %2 = vector.load %arg2[%c0_1, %c0_2] : memref<96x128xbf16, #tpu.memory_space<vmem>>, vector<96x128xbf16>
    %cst = arith.constant dense<0.000000e+00> : vector<256x128xf32>
    %3 = tpu.matmul %1, %2, %cst {dimension_numbers = #tpu.dot_dimension_numbers<[1], [0], [0], [1], [0, 0, 1, 1], [], []>} : vector<256x96xbf16>, vector<96x128xbf16>, vector<256x128xf32> -> vector<256x128xf32>
    %4 = arith.truncf %3 : vector<256x128xf32> to vector<256x128xbf16>
    %c0_3 = arith.constant 0 : index
    %c0_4 = arith.constant 0 : index
    %5 = vector.load %arg3[%c0_3, %c0_4] : memref<256x128xbf16, #tpu.memory_space<vmem>>, vector<256x128xbf16>
    tpu.vector_store %arg3[%c0_3, %c0_4], %4 {strides = array<i32>} : memref<256x128xbf16, #tpu.memory_space<vmem>>, vector<256x128xbf16>,
    return
  }
  func.func @transform_0(%arg0: i32) -> (i32, i32) {
    %c0_i32 = arith.constant 0 : i32
    %c0_i32_0 = arith.constant 0 : i32
    return %arg0, %c0_i32 : i32, i32
  }
  func.func @transform_1(%arg0: i32) -> (i32, i32) {
    %c0_i32 = arith.constant 0 : i32
    %c0_i32_0 = arith.constant 0 : i32
    %c0_i32_1 = arith.constant 0 : i32
    return %c0_i32, %c0_i32_0 : i32, i32
  }
  func.func @transform_2(%arg0: i32) -> (i32, i32) {
    %c0_i32 = arith.constant 0 : i32
    %c0_i32_0 = arith.constant 0 : i32
    return %arg0, %c0_i32 : i32, i32
  }
}

</mosaic_0001>

<bundles_post_ra>
// kernel: tpu_custom_call.1
= control target key start
LH: loop header
LB: loop body
LE: loop exit
PB: predicated region body
PF: predicated region fallthrough
CT: control target
= control target key end

     0   :  { %7 = vsyncpa [#allocation3], 0  ;;  %s1330_s0 = inlined_call_operand.vmem [shape: f32[300,96], index: 0, kind: input, shape index: {}]   ;;  %s1331_s1 = inlined_call_operand.vmem [shape: bf16[96,128], index: 1, kind: input, shape index: {}]   ;;  %s1332_s2 = inlined_call_operand.hbm [shape: bf16[300,128], index: 2, kind: output, shape index: {}]  }
   0x1   :  { %9 = vsyncpa [#allocation3 + $0x1], 0  ;;  %s1122_s9 = smov 0   ;;  %s1124_s10 = smov 0  }
   0x2   :  { %s1126_s11 = smov 0   ;;  %s1128_s12 = smov 0  }
   0x3 LB: > { %s1143_s13 = sadd.s32 4294967295, %s1102_s12   ;;  %s718_s14 = sadd.s32 4294967294, %s1102_s12   ;;  %s1102_s12 = sphi %s1128_s12, %s1338_s12   ;;  %s1098_s11 = sphi %s1126_s11, %s1337_s11   ;;  %s1094_s10 = sphi %s1124_s10, %s1336_s10   ;;  %s1090_s9 = sphi %s1122_s9, %s1335_s9  }
   0x4   : > { %s1147_s15 = sadd.s32 1, %s1102_s12   ;;  %s69_s16 = sadd.s32 1, %s1098_s11 }
   0x5   : > { %s66_s17 = ssub.s32 %s1102_s12, %s1147_s15  ;;  %p79_p0 = scmp.ne.s32.totalorder %s1098_s11, %s1094_s10 }
   0x6   : > { %p67_p1 = scmp.eq.s32.totalorder %s66_s17, 0  ;;  %p80_p2 = scmp.eq.s32.totalorder %s1143_s13, 1 }
   0x7   : > { %p85_p3 = scmp.ne.s32.totalorder %s1094_s10, %s1090_s9  ;;  %p86_p4 = scmp.eq.s32.totalorder %s718_s14, 1 }
   0x8   : > { %s1158_s18 = scalar_select %p67_p1, %s1098_s11, %s69_s16  }
   0x9   : > { %p1160_p5 = por %p80_p2, %p79_p0  ;;  %p1164_p6 = por %p86_p4, %p85_p3 }
   0xa   : > { %p721_p7 = scmp.ge.s32.totalorder %s1102_s12, 1  ;;  %p124_p8 = scmp.lt.s32.totalorder %s1102_s12, 3 }
   0xc   : > { %p125_p9 = pnand %p721_p7, %p124_p8 }
   0xd   : > { %v1034_v0 = vld [vmem:[%s1331_s1] sm:$0xff] (!%p125_p9)   ;;  %s1174_s23 = sshll.u32 (!%p125_p9), %s1143_s13, 5  ;;  %v1035_v1 = vld [vmem:[%s1331_s1 + $0x8] sm:$0xff] (!%p125_p9)   ;;  %v1036_v2 = vld [vmem:[%s1331_s1 + $0x10] sm:$0xff] (!%p125_p9)   ;;  %vm266_vm0 = vcmask (!%p125_p9), 785408   ;;  %s147_s17 = sand.u32 (!%p125_p9), 1, %s1094_s10  }
   0xe   : > { %128 = sbr.rel (%p125_p9) target bundleno = 308 (0x134), region = 28  ;;  %p155_p10 = scmp.lt.s32.totalorder (!%p125_p9), %s1174_s23, 37  ;;  %938 = vmatprep.subr.bf16.mxu0 (!%p125_p9), %v1034_v0  ;;  %982 = vmatprep.subr.bf16.mxu1 (!%p125_p9), %v1034_v0  ;;  %v1037_v6 = vld [vmem:[%s1331_s1 + $0x18] sm:$0xff] (!%p125_p9)   ;;  %v1038_v10 = vld [vmem:[%s1331_s1 + $0x20] sm:$0xff] (!%p125_p9)   ;;  %v1039_v11 = vld [vmem:[%s1331_s1 + $0x28] sm:$0xff] (!%p125_p9)  }
   0xf   : > { %939 = vmatpush3.bf16.msra.mxu0 (!%p125_p9), %v1034_v0  ;;  %988 = vmatpush3.bf16.msra.mxu1 (!%p125_p9), %v1034_v0  ;;  %s722_s21 = sshll.u32 (!%p125_p9), %s147_s17, 7  ;;  %s1269_s24 = scalar_lea.sflag (!%p125_p9), [#allocation3], %s147_s17 }
  0x10   : > { %940 = vmatprep.subr.bf16.mxu0 (!%p125_p9), %v1035_v1  ;;  %983 = vmatprep.subr.bf16.mxu1 (!%p125_p9), %v1035_v1  ;;  %s1249_s22 = scalar_lea.vmem (!%p125_p9), [#allocation2], %s722_s21 }
  0x13   : > { %941 = vmatpush3.bf16.msra.mxu0 (!%p125_p9), %v1035_v1  ;;  %989 = vmatpush3.bf16.msra.mxu1 (!%p125_p9), %v1035_v1 }
  0x14   : > { %942 = vmatprep.subr.bf16.mxu0 (!%p125_p9), %v1036_v2  ;;  %984 = vmatprep.subr.bf16.mxu1 (!%p125_p9), %v1036_v2 }
  0x15   : > { %s156_s26 = scalar_select %p155_p10, %s1174_s23, 37 }
  0x16   : > { %s645_s25 = ssub.s32 (%p1160_p5), 38, %s1174_s23 }
  0x17   : > { %s724_s29 = sshll.u32 %s156_s26, 3  ;;  %943 = vmatpush3.bf16.msra.mxu0 %v1036_v2  ;;  %990 = vmatpush3.bf16.msra.mxu1 %v1036_v2  ;;  %p646_p11 = scmp.lt.s32.totalorder (%p1160_p5), %s645_s25, 32 }
  0x18   : > { %s1187_s4 = scalar_lea.vmem %s1330_s0, %s724_s29  ;;  %944 = vmatprep.subr.bf16.mxu0 %v1037_v6  ;;  %985 = vmatprep.subr.bf16.mxu1 %v1037_v6 }
  0x19   : > { %v170_v3 = vld [vmem:[%s1187_s4] sm:$0xff]  ;;  %v171_v4 = vld [vmem:[%s1187_s4 + $0x8] sm:$0xff]  ;;  %v172_v12 = vld [vmem:[%s1187_s4 + $0x10] sm:$0xff] }
  0x1a   : > { %v186_v5 = vld [vmem:[%s1187_s4 + $0x80] sm:$0xff]  ;;  %v202_v7 = vpack.c.bf16 %v171_v4, %v170_v3  ;;  %v187_v8 = vld [vmem:[%s1187_s4 + $0x88] sm:$0xff]  ;;  %v173_v13 = vld [vmem:[%s1187_s4 + $0x18] sm:$0xff] }
  0x1b   : > { %v210_v9 = vpack.c.bf16 %v187_v8, %v186_v5  ;;  %945 = vmatpush3.bf16.msra.mxu0 %v1037_v6  ;;  %991 = vmatpush3.bf16.msra.mxu1 %v1037_v6  ;;  %v188_v14 = vld [vmem:[%s1187_s4 + $0x90] sm:$0xff]  ;;  %v189_v15 = vld [vmem:[%s1187_s4 + $0x98] sm:$0xff]  ;;  %v174_v16 = vld [vmem:[%s1187_s4 + $0x20] sm:$0xff]  ;;  %v203_v20 = vpack.c.bf16 %v173_v13, %v172_v12 }
  0x1c   : > { %950 = vmatprep.mubr.msk.bf16.mxu0 %vm266_vm0, %v202_v7  ;;  %946 = vmatprep.subr.bf16.mxu0 %v1038_v10  ;;  %v175_v17 = vld [vmem:[%s1187_s4 + $0x28] sm:$0xff]  ;;  %v190_v18 = vld [vmem:[%s1187_s4 + $0xa0] sm:$0xff]  ;;  %v211_v21 = vpack.c.bf16 %v189_v15, %v188_v14  ;;  %v176_v24 = vld [vmem:[%s1187_s4 + $0x30] sm:$0xff] }
  0x1d   : > { %966 = vmatprep.mubr.msk.bf16.mxu1 %vm266_vm0, %v210_v9  ;;  %986 = vmatprep.subr.bf16.mxu1 %v1038_v10  ;;  %v191_v19 = vld [vmem:[%s1187_s4 + $0xa8] sm:$0xff]  ;;  %v204_v22 = vpack.c.bf16 %v175_v17, %v174_v16  ;;  %v177_v25 = vld [vmem:[%s1187_s4 + $0x38] sm:$0xff]  ;;  %v192_v26 = vld [vmem:[%s1187_s4 + $0xb0] sm:$0xff] }
  0x1e   : > { %v212_v23 = vpack.c.bf16 %v191_v19, %v190_v18  ;;  %v193_v27 = vld [vmem:[%s1187_s4 + $0xb8] sm:$0xff]  ;;  %v178_v28 = vld [vmem:[%s1187_s4 + $0x40] sm:$0xff]  ;;  %v179_v29 = vld [vmem:[%s1187_s4 + $0x48] sm:$0xff]  ;;  %v205_v32 = vpack.c.bf16 %v177_v25, %v176_v24 }
  0x1f   : > { %947 = vmatpush3.bf16.msra.mxu0 %v1038_v10  ;;  %992 = vmatpush3.bf16.msra.mxu1 %v1038_v10  ;;  %v194_v30 = vld [vmem:[%s1187_s4 + $0xc0] sm:$0xff]  ;;  %v195_v31 = vld [vmem:[%s1187_s4 + $0xc8] sm:$0xff]  ;;  %v213_v33 = vpack.c.bf16 %v193_v27, %v192_v26  ;;  %v206_v34 = vpack.c.bf16 %v179_v29, %v178_v28  ;;  %v180_v36 = vld [vmem:[%s1187_s4 + $0x50] sm:$0xff] }
  0x20   : > { %948 = vmatprep.subr.bf16.mxu0 %v1039_v11  ;;  %987 = vmatprep.subr.bf16.mxu1 %v1039_v11  ;;  %v214_v35 = vpack.c.bf16 %v195_v31, %v194_v30  ;;  %v181_v37 = vld [vmem:[%s1187_s4 + $0x58] sm:$0xff]  ;;  %v196_v38 = vld [vmem:[%s1187_s4 + $0xd0] sm:$0xff]  ;;  %v182_v40 = vld [vmem:[%s1187_s4 + $0x60] sm:$0xff] }
  0x21   : > { %v197_v39 = vld [vmem:[%s1187_s4 + $0xd8] sm:$0xff]  ;;  %v183_v41 = vld [vmem:[%s1187_s4 + $0x68] sm:$0xff]  ;;  %v198_v42 = vld [vmem:[%s1187_s4 + $0xe0] sm:$0xff]  ;;  %v207_v44 = vpack.c.bf16 %v181_v37, %v180_v36 }
  0x22   : > { %v199_v43 = vld [vmem:[%s1187_s4 + $0xe8] sm:$0xff]  ;;  %v215_v45 = vpack.c.bf16 %v197_v39, %v196_v38  ;;  %v208_v46 = vpack.c.bf16 %v183_v41, %v182_v40  ;;  %v184_v48 = vld [vmem:[%s1187_s4 + $0x70] sm:$0xff]  ;;  %v185_v49 = vld [vmem:[%s1187_s4 + $0x78] sm:$0xff] }
  0x23   : > { %949 = vmatpush3.bf16.msra.mxu0 %v1039_v11  ;;  %993 = vmatpush3.bf16.msra.mxu1 %v1039_v11  ;;  %v216_v47 = vpack.c.bf16 %v199_v43, %v198_v42  ;;  %v200_v50 = vld [vmem:[%s1187_s4 + $0xf0] sm:$0xff]  ;;  %v201_v51 = vld [vmem:[%s1187_s4 + $0xf8] sm:$0xff]  ;;  %v209_v52 = vpack.c.bf16 %v185_v49, %v184_v48 }
  0x24   : > { %v217_v53 = vpack.c.bf16 %v201_v51, %v200_v50 }
  0x26   : > { %951 = vmatmul.mubr.msk.bf16.vlgmr.msra.gmra.mrb[0].mxu0 %vm266_vm0, %v203_v20  ;;  %967 = vmatmul.mubr.msk.bf16.vlgmr.msra.gmra.mrb[0].mxu1 %vm266_vm0, %v211_v21 }
  0x27   : > { %954 = vmatprep.mubr.msk.bf16.mxu0 %vm266_vm0, %v204_v22  ;;  %970 = vmatprep.mubr.msk.bf16.mxu1 %vm266_vm0, %v212_v23 }
  0x2e   : > { %955 = vmatmul.mubr.msk.bf16.gmra.mrb[4].mxu0 %vm266_vm0, %v205_v32  ;;  %971 = vmatmul.mubr.msk.bf16.gmra.mrb[4].mxu1 %vm266_vm0, %v213_v33 }
  0x2f   : > { %958 = vmatprep.mubr.msk.bf16.mxu0 %vm266_vm0, %v206_v34  ;;  %974 = vmatprep.mubr.msk.bf16.mxu1 %vm266_vm0, %v214_v35 }
  0x36   : > { %959 = vmatmul.mubr.msk.bf16.gmra.mrb[8].mxu0 %vm266_vm0, %v207_v44  ;;  %975 = vmatmul.mubr.msk.bf16.gmra.mrb[8].mxu1 %vm266_vm0, %v215_v45 }
  0x37   : > { %962 = vmatprep.mubr.msk.bf16.mxu0 %vm266_vm0, %v208_v46  ;;  %978 = vmatprep.mubr.msk.bf16.mxu1 %vm266_vm0, %v216_v47 }
  0x3e   : > { %963 = vmatmul.mubr.msk.bf16.gmra.mrb[12].mxu0 %vm266_vm0, %v209_v52  ;;  %979 = vmatmul.mubr.msk.bf16.gmra.mrb[12].mxu1 %vm266_vm0, %v217_v53 }
  0xf9   : > { %v952_v54 = vpop.f32.mrb[0].mxu0  ;;  %v968_v55 = vpop.f32.mrb[0].mxu1 }
  0xfa   : > { %v349_v56 = vpop.f32.mrb[1].mxu0  ;;  %v413_v57 = vpop.f32.mrb[1].mxu1 }
  0xfb   : > { %v953_v58 = vpop.f32.mrb[2].mxu0  ;;  %v969_v59 = vpop.f32.mrb[2].mxu1 }
  0xfc   : > { %v829_v60 = vpack.c.bf16 %v953_v58, %v952_v54  ;;  %v869_v61 = vpack.c.bf16 %v969_v59, %v968_v55  ;;  %v352_v62 = vpop.f32.mrb[3].mxu0  ;;  %v416_v63 = vpop.f32.mrb[3].mxu1 }
  0xfd   : > { %v824_v0 = vpack.c.bf16 %v352_v62, %v349_v56  ;;  %v864_v1 = vpack.c.bf16 %v416_v63, %v413_v57 }
  0xfe   : > { %901 = vst [vmem:[%s1249_s22 + $0x8] sm:$0xff] %v829_v60   ;;  %909 = vst [vmem:[%s1249_s22 + $0x48] sm:$0xff] %v869_v61  }
  0xff   : > { %825 = vst [vmem:[%s1249_s22] sm:$0xff] %v824_v0   ;;  %908 = vst [vmem:[%s1249_s22 + $0x40] sm:$0xff] %v864_v1  }
 0x101   : > { %v956_v2 = vpop.f32.mrb[4].mxu0  ;;  %v972_v3 = vpop.f32.mrb[4].mxu1 }
 0x102   : > { %v365_v4 = vpop.f32.mrb[5].mxu0  ;;  %v429_v5 = vpop.f32.mrb[5].mxu1 }
 0x103   : > { %v957_v6 = vpop.f32.mrb[6].mxu0  ;;  %v973_v7 = vpop.f32.mrb[6].mxu1 }
 0x104   : > { %v839_v8 = vpack.c.bf16 %v957_v6, %v956_v2  ;;  %v879_v9 = vpack.c.bf16 %v973_v7, %v972_v3  ;;  %v368_v10 = vpop.f32.mrb[7].mxu0  ;;  %v432_v11 = vpop.f32.mrb[7].mxu1 }
 0x105   : > { %v834_v12 = vpack.c.bf16 %v368_v10, %v365_v4  ;;  %v874_v13 = vpack.c.bf16 %v432_v11, %v429_v5 }
 0x106   : > { %903 = vst [vmem:[%s1249_s22 + $0x18] sm:$0xff] %v839_v8   ;;  %911 = vst [vmem:[%s1249_s22 + $0x58] sm:$0xff] %v879_v9  }
 0x107   : > { %902 = vst [vmem:[%s1249_s22 + $0x10] sm:$0xff] %v834_v12   ;;  %910 = vst [vmem:[%s1249_s22 + $0x50] sm:$0xff] %v874_v13  }
 0x109   : > { %v960_v14 = vpop.f32.mrb[8].mxu0  ;;  %v976_v15 = vpop.f32.mrb[8].mxu1 }
 0x10a   : > { %v381_v16 = vpop.f32.mrb[9].mxu0  ;;  %v445_v17 = vpop.f32.mrb[9].mxu1 }
 0x10b   : > { %v961_v18 = vpop.f32.mrb[10].mxu0  ;;  %v977_v19 = vpop.f32.mrb[10].mxu1 }
 0x10c   : > { %v849_v20 = vpack.c.bf16 %v961_v18, %v960_v14  ;;  %v889_v21 = vpack.c.bf16 %v977_v19, %v976_v15  ;;  %v384_v22 = vpop.f32.mrb[11].mxu0  ;;  %v448_v23 = vpop.f32.mrb[11].mxu1 }
 0x10d   : > { %v844_v24 = vpack.c.bf16 %v384_v22, %v381_v16  ;;  %v884_v25 = vpack.c.bf16 %v448_v23, %v445_v17 }
 0x10e   : > { %905 = vst [vmem:[%s1249_s22 + $0x28] sm:$0xff] %v849_v20   ;;  %913 = vst [vmem:[%s1249_s22 + $0x68] sm:$0xff] %v889_v21  }
 0x10f   : > { %904 = vst [vmem:[%s1249_s22 + $0x20] sm:$0xff] %v844_v24   ;;  %912 = vst [vmem:[%s1249_s22 + $0x60] sm:$0xff] %v884_v25  }
 0x111   : > { %v964_v26 = vpop.f32.mrb[12].mxu0  ;;  %v980_v27 = vpop.f32.mrb[12].mxu1  ;;  %643 = sbr.rel (!%p1160_p5) target bundleno = 308 (0x134), region = 32 }
 0x112   : > { %v397_v28 = vpop.f32.mrb[13].mxu0  ;;  %v461_v29 = vpop.f32.mrb[13].mxu1 }
 0x113   : > { %v965_v30 = vpop.f32.mrb[14].mxu0  ;;  %v981_v31 = vpop.f32.mrb[14].mxu1 }
 0x114   : > { %v859_v32 = vpack.c.bf16 %v965_v30, %v964_v26  ;;  %v899_v33 = vpack.c.bf16 %v981_v31, %v980_v27  ;;  %v400_v34 = vpop.f32.mrb[15].mxu0  ;;  %v464_v35 = vpop.f32.mrb[15].mxu1 }
 0x115   : > { %v854_v36 = vpack.c.bf16 %v400_v34, %v397_v28  ;;  %v894_v37 = vpack.c.bf16 %v464_v35, %v461_v29 }
 0x116   : > { %907 = vst [vmem:[%s1249_s22 + $0x38] sm:$0xff] %v859_v32   ;;  %915 = vst [vmem:[%s1249_s22 + $0x78] sm:$0xff] %v899_v33  }
 0x117   : > { %906 = vst [vmem:[%s1249_s22 + $0x30] sm:$0xff] %v854_v36   ;;  %914 = vst [vmem:[%s1249_s22 + $0x70] sm:$0xff] %v894_v37  }
 0x118   : > { %s1340_s25 = smov (!%p646_p11, %s645_s25), 32 }
 0x119   : > { %s1274_s26 = sshll.u32 %s1340_s25, 6 }
 0x11a   : > { %s650_s27 = ssub.s32 2048, %s1274_s26 }
 0x11b   : > { %651 = vsyncadd %s1269_s24, %s650_s27  ;;  %p782_p12 = scmp.ne.s32.totalorder %s1274_s26, 0  ;;  %s820_s28 = sshll.u32 %s1143_s13, 11 }
 0x11c   : > { %s1283_s30 = scalar_lea.hbm %s1332_s2, %s820_s28  ;;  %s656_s23 = sshll.u32 %s1249_s22, 4  ;;  %s1286_s23 = int_to_ptr.vmem [resolvable:$true] %s656_s23 }
 0x11d   : > { %s1040_s3 = scalar_lea.vmem %s1286_s23, %s1274_s26  ;;  %s1104_s4 = smov [#allocation2]  }
 0x11e   : > { %p1041_p13 = scmp.ne.s32.totalorder %s1286_s23, %s1040_s3  ;;  %s1044_s5 = sshll.u32 %s1104_s4, 4  ;;  %s1045_s5 = int_to_ptr.vmem [resolvable:$false] %s1044_s5 }
 0x11f   : > { %s1046_s13 = scalar_lea.vmem %s1045_s5, 4096  ;;  %p1047_p2 = scmp.lt.s32.totalorder %s1286_s23, %s1045_s5 }
 0x120   : > { %p1042_p0 = pnand %p1041_p13, %p782_p12  ;;  %p1048_p3 = scmp.lt.s32.totalorder %s1046_s13, %s1040_s3 }
 0x122   : > { %p1043_p1 = pneg %p1042_p0  ;;  %p1049_p4 = por %p1048_p3, %p1047_p2 }
 0x124   : > { %p1050_p5 = pnand %p1049_p4, %p1043_p1 }
 0x126   : > { %1053 = shalt.err (!%p1050_p5)
}
 0x127   : > { %s1054_s6 = scalar_lea.hbm %s1283_s30, %s1274_s26  ;;  %s1058_s14 = scalar_lea.hbm %s1332_s2, 2432 }
 0x128   : > { %p1055_p7 = scmp.ne.s32.totalorder %s1283_s30, %s1054_s6  ;;  %p1059_p10 = scmp.lt.u32.totalorder %s1283_s30, %s1332_s2 }
 0x129   : > { %p1060_p11 = scmp.lt.u32.totalorder %s1058_s14, %s1054_s6  ;;  %p1062_p0 = scmp.lt.u32.totalorder %s1054_s6, %s1283_s30 }
 0x12a   : > { %p1056_p8 = pnand %p1055_p7, %p782_p12 }
 0x12b   : > { %p1061_p13 = por %p1060_p11, %p1059_p10 }
 0x12c   : > { %p1057_p9 = pneg %p1056_p8 }
 0x12d   : > { %p1063_p1 = por %p1062_p0, %p1061_p13 }
 0x12f   : > { %p1064_p2 = pnand %p1063_p1, %p1057_p9 }
 0x131   : > { %1067 = shalt.err (!%p1064_p2)
}
 0x132   : > { %s1105_s21 = smov 64   ;;  %s1106_s22 = smov 4  }
 0x133   : > { %662 = dma.vmem_to_hbm [thread:$0]  (%p782_p12), %s1286_s23, %s1274_s26, %s1283_s30, %s1269_s24, %s1105_s21, %s1105_s21, %s1106_s22  }
 0x134 PF: > { %p999_p3 = scmp.ge.s32.totalorder %s1102_s12, 2  ;;  %s671_s25 = sand.u32 1, %s1090_s9  }
 0x135   : > { %s672_s27 = scalar_lea.sflag [#allocation3], %s671_s25 }
 0x136   : > { %p996_p4 = pnand %p999_p3, %p1164_p6 }
 0x138   : > { %1085 = dma.done.wait (!%p996_p4), %s672_s27, 2048  }
 0x139   : > { %1087 = vsyncadd (!%p996_p4), %s672_s27, 4294965248  ;;  %p12_p5 = scmp.ge.s32.totalorder %s1147_s15, 4   ;;  %s1335_s9 = smov %s1094_s10 }
 0x13a   : > { %s1336_s10 = smov %s1098_s11  ;;  %s1337_s11 = smov %s1158_s18 }
 0x13b   : > { %s1338_s12 = smov %s1147_s15  ;;  %14 = sbr.rel (!%p12_p5) target bundleno = 3 (0x3), region = 63 }
 0x142   :  { %677 = vsyncpa [#allocation3], 1 }
 0x143   :  { %679 = vsyncpa [#allocation3 + $0x1], 1 }

</bundles_post_ra>
